<compile_context>
chip_gen: v7x
topology: tpu7x:2x2x1
jax: 0.10.0
libtpu: 0.0.40
codegen_flags: <defaults>
</compile_context>

<pallas_src>
import functools

import jax
import jax.numpy as jnp
from jax.experimental import pallas as pl
from jax.experimental.pallas import tpu as pltpu


def _round_up(x, m):
    return ((x + m - 1) // m) * m


def _one_rest_kernel(x_ref, cen_ref, lab_ref, logits_ref, part_ref, *, B, D, C, TB):
    """Per-batch-tile body.  Batch (TB, multiple of 128) lives on the lane axis,
    classes (C << 128) on sublanes, so every post-matmul temp is lane-dense."""
    i = pl.program_id(0)

    x = x_ref[...]                        # (TB, D), native dtype
    cen = cen_ref[...]                    # (K, D),  native dtype

    # dot_t[k, b] = <centers_k, x_b>  (contract the feature dim of both operands).
    dot_t = jax.lax.dot_general(
        cen, x,
        dimension_numbers=(((1,), (1,)), ((), ())),
        preferred_element_type=jnp.float32)            # (K, TB) -- batch on lanes

    # ||x||^2 as a lane-dense (1, TB) row via a second (free) MXU product.
    xf = x.astype(jnp.float32)
    xsq = xf * xf                                      # (TB, D)
    ones_d = jnp.ones((1, D), dtype=jnp.float32)
    f2_t = jax.lax.dot_general(
        ones_d, xsq,
        dimension_numbers=(((1,), (1,)), ((), ())),
        preferred_element_type=jnp.float32)            # (1, TB)

    # ||c||^2 recomputed in-kernel (tiny vs the x stream; drops one input stream).
    cenf = cen.astype(jnp.float32)
    c2 = jnp.sum(cenf * cenf, axis=1, keepdims=True)   # (K, 1)

    inv_d = 1.0 / float(D)
    # logits = dot - (||x||^2 - 2 dot + ||c||^2)/D = dot*(1+2/D) - (||x||^2+||c||^2)/D
    logits_t = dot_t * (1.0 + 2.0 * inv_d) - (f2_t + c2) * inv_d   # (K, TB)
    logits_ref[...] = logits_t.astype(logits_ref.dtype)            # lane-dense store

    # --- one-vs-rest two-way cross entropy, all (C, TB) lane-dense ---
    z_rest = logits_t[C:C + 1, :]                      # (1, TB)  last row = "rest"
    z_cls = logits_t[:C, :]                            # (C, TB)

    lab = lab_ref[0]                                   # (1, TB) int32
    cls_ids = jax.lax.broadcasted_iota(jnp.int32, (C, TB), 0)        # sublane iota
    col_ids = jax.lax.broadcasted_iota(jnp.int32, (1, TB), 1) + i * TB
    valid = col_ids < B                                # (1, TB) real (non-pad) columns
    onehot = jnp.logical_and(lab == cls_ids, valid)    # (C, TB)

    diff = z_cls - z_rest
    # 2-way logsumexp with a single exp:  max + log(1 + exp(-|diff|))
    lse = jnp.maximum(z_cls, z_rest) + jnp.log(1.0 + jnp.exp(-jnp.abs(diff)))
    chosen = jnp.where(onehot, z_cls, z_rest)          # one vsel
    ce = jnp.where(valid, lse - chosen, 0.0)           # (C, TB), padded cols zeroed

    # Tile-local reductions over the lane (batch) axis via the idle MXU; the result
    # lands directly in lane-row orientation (1, C).
    ones_tb = jnp.ones((1, TB), dtype=jnp.float32)
    ce_sum = jax.lax.dot_general(
        ones_tb, ce,
        dimension_numbers=(((1,), (1,)), ((), ())),
        preferred_element_type=jnp.float32)            # (1, C)
    cnt = jax.lax.dot_general(
        ones_tb, onehot.astype(jnp.float32),
        dimension_numbers=(((1,), (1,)), ((), ())),
        preferred_element_type=jnp.float32)            # (1, C)

    # Single merged partials block: row 0 = [ce_sum | counts], rows 1..7 zero.
    row = jnp.concatenate([ce_sum, cnt], axis=1)       # (1, 2C)
    row8 = jax.lax.broadcasted_iota(jnp.int32, (8, 2 * C), 0)
    part_ref[...] = jnp.where(row8 == 0, row, 0.0)


def _choose_tile_b(B, D, itemsize):
    """Lane-dense batch tile (multiple of 128) sized against a ~2 MiB x-tile VMEM
    target (double-buffered working set stays well under the 16/32/32 MiB scoped-VMEM
    defaults of v5e/v6e/v7x), capped so large batches split into >= 2 grid steps
    (v7x has two TensorCores)."""
    target_bytes = 2 << 20
    tb = max(256, target_bytes // max(D * itemsize, 1))
    tb = _round_up(min(tb, 8192), 128)
    b128 = _round_up(B, 128)
    tb = min(tb, b128)
    half = (b128 // 2) // 128 * 128
    if half >= 128:
        tb = min(tb, half)
    return max(tb, 128)


def one_rest_loss_emp(x, centers, labels=None, *, tile_b=None):
    """Returns (logits, loss) matching OneRestLoss_emp.forward(x, y, labels)."""
    B, D = x.shape
    K, Dc = centers.shape
    assert D == Dc, "feat_dim mismatch between x and centers"
    C = K - 1                                   # num_classes; last center row = "rest"

    itemsize = jnp.dtype(x.dtype).itemsize
    if tile_b is None:
        TB = _choose_tile_b(B, D, itemsize)
    else:
        TB = max(128, _round_up(min(tile_b, 8192), 128))
        TB = min(TB, _round_up(B, 128))
    B_pad = _round_up(B, TB)
    num_tiles = B_pad // TB

    # Labels: lane-dense (num_tiles, 1, TB) int32 rows; padded/absent rows get -1
    # which matches no class (onehot all-false, contributes nothing to the loss).
    # TODO(synk): labels outside [0, num_classes) (including the "rest" index) are
    # treated as "no class"; the PyTorch reference (pd.get_dummies) would add a column.
    if labels is None:
        lab = jnp.full((B,), -1, dtype=jnp.int32)
    else:
        lab = labels.astype(jnp.int32)
    if B_pad != B:
        x_in = jnp.pad(x, ((0, B_pad - B), (0, 0)))
        lab = jnp.pad(lab, (0, B_pad - B), constant_values=-1)
    else:
        x_in = x
    lab3d = lab.reshape(num_tiles, 1, TB)

    kernel = functools.partial(_one_rest_kernel, B=B, D=D, C=C, TB=TB)

    logits_t, parts = pl.pallas_call(
        kernel,
        out_shape=(
            jax.ShapeDtypeStruct((K, B_pad), jnp.float32),             # logits, (K, B) orient.
            jax.ShapeDtypeStruct((num_tiles * 8, 2 * C), jnp.float32),  # [ce_sum | counts]
        ),
        grid=(num_tiles,),
        in_specs=[
            pl.BlockSpec((TB, D), lambda i: (i, 0)),         # x tile (pipelined over batch)
            pl.BlockSpec((K, D), lambda i: (0, 0)),          # centers (grid-invariant)
            pl.BlockSpec((1, 1, TB), lambda i: (i, 0, 0)),   # labels tile (lane-dense row)
        ],
        out_specs=(
            pl.BlockSpec((K, TB), lambda i: (0, i)),         # lane-dense logits writeback
            pl.BlockSpec((8, 2 * C), lambda i: (i, 0)),      # merged per-tile partials
        ),
        compiler_params=pltpu.CompilerParams(
            dimension_semantics=("parallel",),               # independent tiles (v7x megacore)
            vmem_limit_bytes=32 * 1024 * 1024,
        ),
    )(x_in, centers, lab3d)

    logits = logits_t[:, :B].T                               # back to (B, K) for the caller
    if labels is None:
        return logits, jnp.float32(0.0)

    # Global finalization: mean over the WHOLE batch; pd.get_dummies only yields
    # columns for classes actually present in the batch -> presence mask from counts.
    totals = jnp.sum(parts, axis=0)                          # (2C,)
    ce_total, counts = totals[:C], totals[C:]
    loss = jnp.sum(jnp.where(counts > 0.0, ce_total / float(B), 0.0))
    return logits, loss


def _reference(x, centers, labels):
    # pure-JAX reference of the PyTorch forward (for sanity checking)
    import numpy as np
    D = x.shape[1]
    dot = x @ centers.T
    f2 = jnp.sum(x * x, axis=1, keepdims=True)
    c2 = jnp.sum(centers * centers, axis=1, keepdims=True)
    l2 = (f2 - 2.0 * dot + c2.T) / float(D)
    logits = dot - l2
    loss = 0.0
    labels_np = np.array(labels)
    for c in sorted(set(labels_np.tolist())):                 # pd.get_dummies columns
        two = jnp.stack([logits[:, -1], logits[:, c]], axis=1)   # (B, 2)
        tgt = (labels == c).astype(jnp.int32)
        lse = jax.nn.logsumexp(two, axis=1)
        chosen = jnp.take_along_axis(two, tgt[:, None], axis=1)[:, 0]
        loss = loss + jnp.mean(lse - chosen)
    return logits, loss


if __name__ == "__main__":
    key = jax.random.PRNGKey(0)
    k_x, k_c, k_l, k_x2, k_c2, k_l2 = jax.random.split(key, 6)

    # --- small demo shapes (single tile, padded batch) ---
    num_classes, feat_dim, batch = 4, 32, 8
    centers = 0.1 * jax.random.normal(k_c, (num_classes + 1, feat_dim), dtype=jnp.float32)
    x = jax.random.normal(k_x, (batch, feat_dim), dtype=jnp.float32)
    labels = jax.random.randint(k_l, (batch,), 0, num_classes, dtype=jnp.int32)

    logits, loss = one_rest_loss_emp(x, centers, labels)
    jax.block_until_ready((logits, loss))
    ref_logits, ref_loss = _reference(x, centers, labels)
    assert jnp.allclose(logits, ref_logits, atol=1e-4, rtol=1e-4)
    assert jnp.allclose(loss, ref_loss, atol=1e-4, rtol=1e-4)

    # --- larger case: multiple batch tiles + padding (exercises the pipelined path,
    #     auto tile sizing, and the global presence/mean reduction) ---
    num_classes2, feat_dim2, batch2 = 10, 64, 600
    centers2 = 0.1 * jax.random.normal(k_c2, (num_classes2 + 1, feat_dim2), dtype=jnp.float32)
    x2 = jax.random.normal(k_x2, (batch2, feat_dim2), dtype=jnp.float32)
    labels2 = jax.random.randint(k_l2, (batch2,), 0, num_classes2, dtype=jnp.int32)

    logits2, loss2 = one_rest_loss_emp(x2, centers2, labels2)
    jax.block_until_ready((logits2, loss2))
    ref_logits2, ref_loss2 = _reference(x2, centers2, labels2)
    assert jnp.allclose(logits2, ref_logits2, atol=1e-3, rtol=1e-4)
    assert jnp.allclose(loss2, ref_loss2, atol=1e-3, rtol=1e-4)

    print("KERNEL_OK")
</pallas_src>

<mosaic_0001>
module attributes {stable_mosaic.version = 11 : i64} {
  func.func @_one_rest_kernel(%arg0: i32, %arg1: memref<128x32xf32, #tpu.memory_space<vmem>>, %arg2: memref<5x32xf32, #tpu.memory_space<vmem>>, %arg3: memref<1x1x128xi32, #tpu.memory_space<vmem>>, %arg4: memref<5x128xf32, #tpu.memory_space<vmem>>, %arg5: memref<8x8xf32, #tpu.memory_space<vmem>>) attributes {dimension_semantics = [#tpu.dimension_semantics<parallel>], iteration_bounds = array<i64: 1>, scalar_prefetch = 0 : i64, scratch_operands = 0 : i64, tpu.core_type = #tpu.core_type<tc>, window_params = [{transform_indices = @transform_0, window_bounds = array<i64: 128, 32>}, {pipeline_mode = #tpu.pipeline_mode<synchronous>, transform_indices = @transform_1, window_bounds = array<i64: 5, 32>}, {transform_indices = @transform_2, window_bounds = array<i64: 1, 1, 128>}, {transform_indices = @transform_3, window_bounds = array<i64: 5, 128>}, {transform_indices = @transform_4, window_bounds = array<i64: 8, 8>}]} {
    %c0 = arith.constant 0 : index
    %c0_0 = arith.constant 0 : index
    %0 = vector.load %arg1[%c0, %c0_0] : memref<128x32xf32, #tpu.memory_space<vmem>>, vector<128x32xf32>
    %c0_1 = arith.constant 0 : index
    %c0_2 = arith.constant 0 : index
    %1 = vector.load %arg2[%c0_1, %c0_2] : memref<5x32xf32, #tpu.memory_space<vmem>>, vector<5x32xf32>
    %cst = arith.constant dense<0.000000e+00> : vector<5x128xf32>
    %2 = tpu.matmul %1, %0, %cst {dimension_numbers = #tpu.dot_dimension_numbers<[1], [1], [0], [0], [0, 0, 1, 0], [], []>} : vector<5x32xf32>, vector<128x32xf32>, vector<5x128xf32> -> vector<5x128xf32>
    %3 = arith.mulf %0, %0 : vector<128x32xf32>
    %cst_3 = arith.constant 1.000000e+00 : f32
    %4 = vector.broadcast %cst_3 : f32 to vector<1x32xf32>
    %cst_4 = arith.constant dense<0.000000e+00> : vector<1x128xf32>
    %5 = tpu.matmul %4, %3, %cst_4 {dimension_numbers = #tpu.dot_dimension_numbers<[1], [1], [0], [0], [0, 0, 1, 0], [], []>} : vector<1x32xf32>, vector<128x32xf32>, vector<1x128xf32> -> vector<1x128xf32>
    %6 = arith.mulf %1, %1 : vector<5x32xf32>
    %cst_5 = arith.constant dense<0.000000e+00> : vector<5xf32>
    %7 = vector.multi_reduction <add>, %6, %cst_5 [1] : vector<5x32xf32> to vector<5xf32>
    %8 = vector.shape_cast %7 : vector<5xf32> to vector<5x1xf32>
    %cst_6 = arith.constant 1.062500e+00 : f32
    %9 = vector.broadcast %cst_6 : f32 to vector<5x128xf32>
    %10 = arith.mulf %2, %9 : vector<5x128xf32>
    %11 = vector.broadcast %5 : vector<1x128xf32> to vector<5x128xf32>
    %12 = vector.broadcast %8 : vector<5x1xf32> to vector<5x128xf32>
    %13 = arith.addf %11, %12 : vector<5x128xf32>
    %cst_7 = arith.constant 3.125000e-02 : f32
    %14 = vector.broadcast %cst_7 : f32 to vector<5x128xf32>
    %15 = arith.mulf %13, %14 : vector<5x128xf32>
    %16 = arith.subf %10, %15 : vector<5x128xf32>
    %c0_8 = arith.constant 0 : index
    %c0_9 = arith.constant 0 : index
    %17 = vector.load %arg4[%c0_8, %c0_9] : memref<5x128xf32, #tpu.memory_space<vmem>>, vector<5x128xf32>
    tpu.vector_store %arg4[%c0_8, %c0_9], %16 {strides = array<i32>} : memref<5x128xf32, #tpu.memory_space<vmem>>, vector<5x128xf32>,
    %18 = vector.extract_strided_slice %16 {offsets = [4, 0], sizes = [1, 128], strides = [1, 1]} : vector<5x128xf32> to vector<1x128xf32>
    %19 = vector.extract_strided_slice %16 {offsets = [0, 0], sizes = [4, 128], strides = [1, 1]} : vector<5x128xf32> to vector<4x128xf32>
    %c0_10 = arith.constant 0 : index
    %c0_11 = arith.constant 0 : index
    %c0_12 = arith.constant 0 : index
    %20 = vector.load %arg3[%c0_10, %c0_11, %c0_12] : memref<1x1x128xi32, #tpu.memory_space<vmem>>, vector<1x1x128xi32>
    %21 = vector.shape_cast %20 : vector<1x1x128xi32> to vector<1x128xi32>
    %22 = tpu.iota {dimensions = array<i32: 0>} : vector<4x128xi32>
    %23 = tpu.iota {dimensions = array<i32: 1>} : vector<1x128xi32>
    %c128_i32 = arith.constant 128 : i32
    %24 = arith.muli %arg0, %c128_i32 : i32
    %25 = vector.broadcast %24 : i32 to vector<1x128xi32>
    %26 = arith.addi %23, %25 : vector<1x128xi32>
    %c8_i32 = arith.constant 8 : i32
    %27 = vector.broadcast %c8_i32 : i32 to vector<1x128xi32>
    %28 = arith.cmpi slt, %26, %27 : vector<1x128xi32>
    %29 = vector.broadcast %21 : vector<1x128xi32> to vector<4x128xi32>
    %30 = arith.cmpi eq, %29, %22 : vector<4x128xi32>
    %31 = vector.broadcast %28 : vector<1x128xi1> to vector<4x128xi1>
    %32 = arith.andi %30, %31 : vector<4x128xi1>
    %33 = vector.broadcast %18 : vector<1x128xf32> to vector<4x128xf32>
    %34 = arith.subf %19, %33 : vector<4x128xf32>
    %35 = vector.broadcast %18 : vector<1x128xf32> to vector<4x128xf32>
    %36 = arith.maximumf %19, %35 : vector<4x128xf32>
    %37 = math.absf %34 : vector<4x128xf32>
    %cst_13 = arith.constant 0.000000e+00 : f32
    %38 = vector.broadcast %cst_13 : f32 to vector<4x128xf32>
    %39 = arith.subf %38, %37 : vector<4x128xf32>
    %40 = math.exp %39 : vector<4x128xf32>
    %cst_14 = arith.constant 1.000000e+00 : f32
    %41 = vector.broadcast %cst_14 : f32 to vector<4x128xf32>
    %42 = arith.addf %41, %40 : vector<4x128xf32>
    %43 = math.log %42 : vector<4x128xf32>
    %44 = arith.addf %36, %43 : vector<4x128xf32>
    %45 = vector.shape_cast %18 : vector<1x128xf32> to vector<1x128xf32>
    %46 = vector.broadcast %45 : vector<1x128xf32> to vector<4x128xf32>
    %47 = arith.select %32, %19, %46 : vector<4x128xi1>, vector<4x128xf32>
    %48 = arith.subf %44, %47 : vector<4x128xf32>
    %cst_15 = arith.constant 0.000000e+00 : f32
    %49 = vector.shape_cast %28 : vector<1x128xi1> to vector<1x128xi1>
    %50 = vector.broadcast %49 : vector<1x128xi1> to vector<4x128xi1>
    %51 = vector.broadcast %cst_15 : f32 to vector<4x128xf32>
    %52 = arith.select %50, %48, %51 : vector<4x128xi1>, vector<4x128xf32>
    %cst_16 = arith.constant 1.000000e+00 : f32
    %53 = vector.broadcast %cst_16 : f32 to vector<1x128xf32>
    %cst_17 = arith.constant dense<0.000000e+00> : vector<1x4xf32>
    %54 = tpu.matmul %53, %52, %cst_17 {dimension_numbers = #tpu.dot_dimension_numbers<[1], [1], [0], [0], [0, 0, 1, 0], [], []>} : vector<1x128xf32>, vector<4x128xf32>, vector<1x4xf32> -> vector<1x4xf32>
    %55 = arith.extui %32 : vector<4x128xi1> to vector<4x128xi32>
    %56 = arith.sitofp %55 : vector<4x128xi32> to vector<4x128xf32>
    %cst_18 = arith.constant dense<0.000000e+00> : vector<1x4xf32>
    %57 = tpu.matmul %53, %56, %cst_18 {dimension_numbers = #tpu.dot_dimension_numbers<[1], [1], [0], [0], [0, 0, 1, 0], [], []>} : vector<1x128xf32>, vector<4x128xf32>, vector<1x4xf32> -> vector<1x4xf32>
    %58 = tpu.concatenate %54, %57 in 1 : vector<1x4xf32>, vector<1x4xf32> -> vector<1x8xf32>
    %59 = tpu.iota {dimensions = array<i32: 0>} : vector<8x8xi32>
    %c0_i32 = arith.constant 0 : i32
    %60 = vector.broadcast %c0_i32 : i32 to vector<8x8xi32>
    %61 = arith.cmpi eq, %59, %60 : vector<8x8xi32>
    %cst_19 = arith.constant 0.000000e+00 : f32
    %62 = vector.shape_cast %58 : vector<1x8xf32> to vector<1x8xf32>
    %63 = vector.broadcast %62 : vector<1x8xf32> to vector<8x8xf32>
    %64 = vector.broadcast %cst_19 : f32 to vector<8x8xf32>
    %65 = arith.select %61, %63, %64 : vector<8x8xi1>, vector<8x8xf32>
    %c0_20 = arith.constant 0 : index
    %c0_21 = arith.constant 0 : index
    %66 = vector.load %arg5[%c0_20, %c0_21] : memref<8x8xf32, #tpu.memory_space<vmem>>, vector<8x8xf32>
    tpu.vector_store %arg5[%c0_20, %c0_21], %65 {strides = array<i32>} : memref<8x8xf32, #tpu.memory_space<vmem>>, vector<8x8xf32>,
    return
  }
  func.func @transform_0(%arg0: i32) -> (i32, i32) {
    %c0_i32 = arith.constant 0 : i32
    %c0_i32_0 = arith.constant 0 : i32
    return %arg0, %c0_i32 : i32, i32
  }
  func.func @transform_1(%arg0: i32) -> (i32, i32) {
    %c0_i32 = arith.constant 0 : i32
    %c0_i32_0 = arith.constant 0 : i32
    %c0_i32_1 = arith.constant 0 : i32
    return %c0_i32, %c0_i32_0 : i32, i32
  }
  func.func @transform_2(%arg0: i32) -> (i32, i32, i32) {
    %c0_i32 = arith.constant 0 : i32
    %c0_i32_0 = arith.constant 0 : i32
    %c0_i32_1 = arith.constant 0 : i32
    return %arg0, %c0_i32, %c0_i32_0 : i32, i32, i32
  }
  func.func @transform_3(%arg0: i32) -> (i32, i32) {
    %c0_i32 = arith.constant 0 : i32
    %c0_i32_0 = arith.constant 0 : i32
    return %c0_i32, %arg0 : i32, i32
  }
  func.func @transform_4(%arg0: i32) -> (i32, i32) {
    %c0_i32 = arith.constant 0 : i32
    %c0_i32_0 = arith.constant 0 : i32
    return %arg0, %c0_i32 : i32, i32
  }
}

</mosaic_0001>

<bundles_post_ra>
// kernel: tpu_custom_call.1
= control target key start
LH: loop header
LB: loop body
LE: loop exit
PB: predicated region body
PF: predicated region fallthrough
CT: control target
= control target key end

     0   :  { %10 = vsyncpa [#allocation3], 0  ;;  %vm35_vm0 = vcmask 261120   ;;  %v805_v2 = vmov 0.0|0.0   ;;  %vm806_vm2 = vmmov 0   ;;  %v807_v9 = vmov 0.0   ;;  %s1002_s0 = inlined_call_operand.vmem [shape: f32[128,32], index: 0, kind: input, shape index: {}]   ;;  %s1003_s1 = inlined_call_operand.vmem [shape: f32[5,32], index: 1, kind: input, shape index: {}]   ;;  %s1004_s2 = inlined_call_operand.vmem [shape: s32[1,1,128], index: 2, kind: input, shape index: {}]   ;;  %s1005_s3 = inlined_call_operand.hbm [shape: f32[5,128], index: 3, kind: output, shape index: {0}]   ;;  %s1006_s4 = inlined_call_operand.hbm [shape: f32[8,8], index: 4, kind: output, shape index: {1}]  }
   0x1   :  { %v18_v0 = vld [vmem:[%s1002_s0] sm:$0xff]  ;;  %v19_v1 = vld [vmem:[%s1002_s0 + $0x8] sm:$0xff]  ;;  %714 = vmatprep.subr.bf16.mxu1 %v805_v2  ;;  %682 = vmatprep.subr.bf16.mxu0 %v805_v2  ;;  %vm847_vm1 = vmpackc.low %vm35_vm0, %vm35_vm0 }
   0x2   :  { %v157_v3 = vmul.f32 %v18_v0, %v18_v0  ;;  %v158_v4 = vmul.f32 %v19_v1, %v19_v1  ;;  %v683_v5 = vpack.c.bf16 %v19_v1, %v18_v0  ;;  %v20_v7 = vld [vmem:[%s1002_s0 + $0x10] sm:$0xff]  ;;  %v21_v8 = vld [vmem:[%s1002_s0 + $0x18] sm:$0xff]  ;;  %669 = vmatprep.mubr.msk.f32.mxu1 %vm806_vm2, %v807_v9 }
   0x3   :  { %v159_v11 = vmul.f32 %v20_v7, %v20_v7  ;;  %v160_v12 = vmul.f32 %v21_v8, %v21_v8 }
   0x4   :  { %v715_v10 = vpack.c.bf16 %v158_v4, %v157_v3  ;;  %685 = vmatpush3.bf16.xpose.msk.msra.mxu0 %vm847_vm1, %v683_v5 }
   0x5   :  { %686 = vmatprep.subr.bf16.mxu0 %v805_v2 }
   0x6   :  { %717 = vmatpush3.bf16.xpose.msk.msra.mxu1 %vm847_vm1, %v715_v10 }
   0x7   :  { %718 = vmatprep.subr.bf16.mxu1 %v805_v2 }
   0x8   :  { %11 = vsyncpa [#allocation5], 0  ;;  %v687_v13 = vpack.c.bf16 %v21_v8, %v20_v7  ;;  %634 = vmatprep.mubr.msk.f32.mxu0 %vm806_vm2, %v807_v9  ;;  %v870_v14 = vld [vmem:[%s1003_s1] sm:$0x1f]  ;;  %v719_v15 = vpack.c.bf16 %v160_v12, %v159_v11  ;;  %vm295_vm3 = vcmask 258048   ;;  %v23_v18 = vld [vmem:[%s1002_s0 + $0x28] sm:$0xff]  ;;  %v300_v53 = vlaneseq }
   0x9   :  { %v294_v16 = vmul.f32 %v870_v14, %v870_v14  ;;  %v22_v17 = vld [vmem:[%s1002_s0 + $0x20] sm:$0xff]  ;;  %v162_v21 = vmul.f32 %v23_v18, %v23_v18  ;;  %v24_v24 = vld [vmem:[%s1002_s0 + $0x30] sm:$0xff]  ;;  %v25_v25 = vld [vmem:[%s1002_s0 + $0x38] sm:$0xff]  ;;  %v808_v59 = vmov 1.0   ;;  %s810_s23 = smov [#allocation2]  }
   0xa   :  { %v161_v20 = vmul.f32 %v22_v17, %v22_v17  ;;  %v691_v22 = vpack.c.bf16 %v23_v18, %v22_v17  ;;  %v163_v26 = vmul.f32 %v24_v24, %v24_v24  ;;  %v164_v27 = vmul.f32 %v25_v25, %v25_v25  ;;  %v26_v30 = vld [vmem:[%s1002_s0 + $0x40] sm:$0xff]  ;;  %v27_v31 = vld [vmem:[%s1002_s0 + $0x48] sm:$0xff]  ;;  %v28_v36 = vld [vmem:[%s1002_s0 + $0x50] sm:$0xff]  ;;  %s504_s24 = sshll.u32 %s810_s23, 4  ;;  %s505_s24 = int_to_ptr.vmem [resolvable:$true] %s504_s24 }
   0xb   :  { %v296_v19 = vsel %vm295_vm3, %v294_v16, 0.0  ;;  %v695_v28 = vpack.c.bf16 %v25_v25, %v24_v24  ;;  %v165_v32 = vmul.f32 %v26_v30, %v26_v30  ;;  %v166_v33 = vmul.f32 %v27_v31, %v27_v31  ;;  %v29_v37 = vld [vmem:[%s1002_s0 + $0x58] sm:$0xff]  ;;  %v30_v42 = vld [vmem:[%s1002_s0 + $0x60] sm:$0xff]  ;;  %v31_v43 = vld [vmem:[%s1002_s0 + $0x68] sm:$0xff]  ;;  %s757_s25 = scalar_lea.vmem %s505_s24, 128  ;;  %p762_p1 = scmp.lt.s32.totalorder %s505_s24, %s505_s24 }
   0xc   :  { %689 = vmatpush3.bf16.xpose.msk.msra.mxu0 %vm847_vm1, %v687_v13  ;;  %297 = vadd.xlane.f32.xlu0 %v296_v19  ;;  %v723_v23 = vpack.c.bf16 %v162_v21, %v161_v20  ;;  %v727_v29 = vpack.c.bf16 %v164_v27, %v163_v26  ;;  %v699_v34 = vpack.c.bf16 %v27_v31, %v26_v30  ;;  %v32_v48 = vld [vmem:[%s1002_s0 + $0x70] sm:$0xff]  ;;  %v33_v49 = vld [vmem:[%s1002_s0 + $0x78] sm:$0xff]  ;;  %v948_v55 = vshrl.u32 %v300_v53, 7  ;;  %v560_v57 = vld [vmem:[%s1004_s2] ss:$0 sm:$0xff]  ;;  %s809_s2 = smov 4   ;;  %p758_p0 = scmp.ne.s32.totalorder %s505_s24, %s757_s25 }
   0xd   :  { %690 = vmatprep.subr.bf16.mxu0 %v805_v2  ;;  %v731_v35 = vpack.c.bf16 %v166_v33, %v165_v32  ;;  %v167_v38 = vmul.f32 %v28_v36, %v28_v36  ;;  %v168_v39 = vmul.f32 %v29_v37, %v29_v37  ;;  %v703_v40 = vpack.c.bf16 %v29_v37, %v28_v36  ;;  %p763_p2 = scmp.lt.s32.totalorder %s757_s25, %s757_s25 }
   0xe   :  { %721 = vmatpush3.bf16.xpose.msk.msra.mxu1 %vm847_vm1, %v719_v15  ;;  %v169_v44 = vmul.f32 %v30_v42, %v30_v42  ;;  %v170_v45 = vmul.f32 %v31_v43, %v31_v43  ;;  %v707_v46 = vpack.c.bf16 %v31_v43, %v30_v42  ;;  %v171_v50 = vmul.f32 %v32_v48, %v32_v48 }
   0xf   :  { %722 = vmatprep.subr.bf16.mxu1 %v805_v2  ;;  %v735_v41 = vpack.c.bf16 %v168_v39, %v167_v38  ;;  %v172_v51 = vmul.f32 %v33_v49, %v33_v49  ;;  %v711_v52 = vpack.c.bf16 %v33_v49, %v32_v48  ;;  %v312_v56 = vand.u32 127, %v300_v53  ;;  %p764_p3 = por %p763_p2, %p762_p1 }
  0x10   :  { %v739_v47 = vpack.c.bf16 %v170_v45, %v169_v44  ;;  %vm321_vm5 = vcmp.eq.s32.totalorder %v560_v57, %v948_v55  ;;  %v302_v60 = vsub.s32 0, %v948_v55  ;;  %v327_v7 = vsub.s32 4, %v948_v55 }
  0x11   :  { %v743_v54 = vpack.c.bf16 %v172_v51, %v171_v50  ;;  %vm316_vm4 = vcmp.lt.s32.totalorder %v312_v56, 8  ;;  %p765_p4 = pnand %p764_p3, %p758_p0 }
  0x12   :  { %vm961_vm6 = vmand %vm321_vm5, %vm316_vm4 }
  0x14   :  { %693 = vmatpush3.bf16.xpose.msk.msra.mxu0 %vm847_vm1, %v691_v22 }
  0x15   :  { %694 = vmatprep.subr.bf16.mxu0 %v805_v2 }
  0x16   :  { %725 = vmatpush3.bf16.xpose.msk.msra.mxu1 %vm847_vm1, %v723_v23 }
  0x17   :  { %726 = vmatprep.subr.bf16.mxu1 %v805_v2 }
  0x1c   :  { %697 = vmatpush3.bf16.xpose.msk.msra.mxu0 %vm847_vm1, %v695_v28 }
  0x1d   :  { %698 = vmatprep.subr.bf16.mxu0 %v805_v2 }
  0x1e   :  { %729 = vmatpush3.bf16.xpose.msk.msra.mxu1 %vm847_vm1, %v727_v29 }
  0x1f   :  { %730 = vmatprep.subr.bf16.mxu1 %v805_v2 }
  0x24   :  { %701 = vmatpush3.bf16.xpose.msk.msra.mxu0 %vm847_vm1, %v699_v34 }
  0x25   :  { %702 = vmatprep.subr.bf16.mxu0 %v805_v2 }
  0x26   :  { %733 = vmatpush3.bf16.xpose.msk.msra.mxu1 %vm847_vm1, %v731_v35 }
  0x27   :  { %734 = vmatprep.subr.bf16.mxu1 %v805_v2 }
  0x2c   :  { %705 = vmatpush3.bf16.xpose.msk.msra.mxu0 %vm847_vm1, %v703_v40 }
  0x2d   :  { %706 = vmatprep.subr.bf16.mxu0 %v805_v2 }
  0x2e   :  { %737 = vmatpush3.bf16.xpose.msk.msra.mxu1 %vm847_vm1, %v735_v41 }
  0x2f   :  { %738 = vmatprep.subr.bf16.mxu1 %v805_v2 }
  0x34   :  { %709 = vmatpush3.bf16.xpose.msk.msra.mxu0 %vm847_vm1, %v707_v46 }
  0x35   :  { %710 = vmatprep.subr.bf16.mxu0 %v805_v2 }
  0x36   :  { %741 = vmatpush3.bf16.xpose.msk.msra.mxu1 %vm847_vm1, %v739_v47 }
  0x37   :  { %742 = vmatprep.subr.bf16.mxu1 %v805_v2 }
  0x3c   :  { %713 = vmatpush3.bf16.xpose.msk.msra.mxu0 %vm847_vm1, %v711_v52 }
  0x3d   :  { %672 = vmatprep.subr.mxu0 %v807_v9 }
  0x3e   :  { %745 = vmatpush3.bf16.xpose.msk.msra.mxu1 %vm847_vm1, %v743_v54 }
  0x3f   :  { %677 = vmatprep.subr.mxu1 %v807_v9 }
  0x43   :  { %635 = vmatmul.mubr.msk.f32.vlgmr.msra.gmra.mrb[0].mxu0 %vm35_vm0, %v870_v14 }
  0x44   :  { %674 = vmatprep.mubr.msk.f32.mxu0 %vm806_vm2, %v807_v9 }
  0x45   :  { %670 = vmatmul.mubr.msk.f32.vlgmr.msra.gmra.mrb[0].mxu1 %vm35_vm0, %v808_v59 }
  0x46   :  { %678 = vmatpush3.xpose.msk.msra.mxu1 %vm961_vm6, %v808_v59  ;;  %679 = vmatprep.mubr.msk.f32.mxu1 %vm806_vm2, %v807_v9 }
  0x49   :  { %680 = vmatmul.mubr.f32.vlgmr.msra.gmra.mrb[2].mxu1 %v808_v59 }
  0x99   :  { %v298_v0 = vpop.xlane.xlu0 %297 }
 0x116   :  { %v153_v61 = vpop.f32.mrb[0].mxu0 }
 0x117   :  { %v636_v62 = vpop.f32.mrb[1].mxu0  ;;  %v299_v4 = vmul.f32 1.0625, %v153_v61 }
 0x118   :  { %v290_v63 = vpop.f32.mrb[0].mxu1 }
 0x119   :  { %v303_v1 = vrot.slane %v290_v63, %v302_v60  ;;  %v671_v2 = vpop.f32.mrb[1].mxu1 }
 0x11b   :  { %v304_v3 = vadd.f32 %v303_v1, %v298_v0 }
 0x11c   :  { %v480_v5 = vpop.f32.mrb[2].mxu1 }
 0x11d   :  { %v305_v6 = vmul.f32 0.03125, %v304_v3  ;;  %v681_v8 = vpop.f32.mrb[3].mxu1  ;;  %485 = vrot.lane.b32.xlu0 %v480_v5, %s809_s2 }
 0x11f   :  { %v306_v10 = vsub.f32 %v299_v4, %v305_v6 }
 0x121   :  { %v328_v9 = vrot.slane %v306_v10, %v327_v7  ;;  %307 = vst [vmem:[#allocation2] sm:$0x1f] %v306_v10 }
 0x123   :  { %v329_v11 = vsub.f32 %v306_v10, %v328_v9  ;;  %v330_v18 = vmax.f32 %v306_v10, %v328_v9  ;;  %v339_v21 = vsel %vm961_vm6, %v306_v10, %v328_v9 }
 0x125   :  { %v331_v12 = vand.u32 2147483647, %v329_v11 }
 0x127   :  { %v332_v13 = vsub.f32 0.0, %v331_v12 }
 0x129   :  { %v333_v14 = vmul.f32 1.442695, %v332_v13 }
 0x12b   :  { %753 = vpow2.f32 %v333_v14 }
 0x135   :  { %v754_v15 = vpop.eup %753 }
 0x136   :  { %v335_v16 = vadd.f32 1.0, %v754_v15 }
 0x138   :  { %755 = vlog2.f32 %v335_v16 }
 0x142   :  { %v756_v17 = vpop.eup %755 }
 0x143   :  { %v337_v19 = vmul.f32 0.6931472, %v756_v17 }
 0x145   :  { %v338_v20 = vadd.f32 %v337_v19, %v330_v18 }
 0x147   :  { %v340_v22 = vsub.f32 %v338_v20, %v339_v21 }
 0x149   :  { %673 = vmatpush3.xpose.msk.msra.mxu0 %vm316_vm4, %v340_v22 }
 0x14c   :  { %675 = vmatmul.mubr.f32.vlgmr.msra.gmra.mrb[2].mxu0 %v808_v59 }
 0x14d   :  { %768 = shalt.err (!%p765_p4)
}
 0x14e   :  { %s769_s28 = scalar_lea.hbm %s1005_s3, 128 }
 0x14f   :  { %p770_p5 = scmp.ne.s32.totalorder %s1005_s3, %s769_s28  ;;  %p773_p6 = scmp.lt.u32.totalorder %s769_s28, %s1005_s3 }
 0x151   :  { %p775_p7 = pnand %p773_p6, %p770_p5 }
 0x153   :  { %778 = shalt.err (!%p775_p7)
}
 0x154   :  { %507 = dma.vmem_to_hbm [thread:$0]  %s505_s24, 128, %s1005_s3, [#allocation3]   ;;  %vm488_vm7 = vcmask 31744   ;;  %vm490_vm8 = vcmp.eq.s32.totalorder %v948_v55, 0  ;;  %vm496_vm9 = vcmask 64512  }
 0x155   :  { %s811_s8 = smov [#allocation4]  }
 0x156   :  { %s514_s9 = sshll.u32 %s811_s8, 4  ;;  %s515_s9 = int_to_ptr.vmem [resolvable:$true] %s514_s9 }
 0x157   :  { %s779_s10 = scalar_lea.vmem %s515_s9, 128  ;;  %p784_p9 = scmp.lt.s32.totalorder %s515_s9, %s515_s9 }
 0x158   :  { %p780_p8 = scmp.ne.s32.totalorder %s515_s9, %s779_s10  ;;  %p785_p10 = scmp.lt.s32.totalorder %s779_s10, %s779_s10 }
 0x15a   :  { %p786_p11 = por %p785_p10, %p784_p9 }
 0x15c   :  { %p787_p12 = pnand %p786_p11, %p780_p8 }
 0x18f   :  { %v486_v23 = vpop.permute.xlu0 %485 }
 0x21f   :  { %v408_v24 = vpop.f32.mrb[2].mxu0 }
 0x220   :  { %v489_v25 = vsel %vm488_vm7, %v408_v24, %v486_v23  ;;  %v676_v26 = vpop.f32.mrb[3].mxu0 }
 0x221   :  { %v494_v27 = vrot.slane %v489_v25, %v302_v60 }
 0x223   :  { %v495_v28 = vsel %vm490_vm8, %v494_v27, 0.0 }
 0x224   :  { %497 = vst.msk [vmem:[#allocation4] sm:$0xff] %vm496_vm9, %v495_v28 }
 0x225   :  { %790 = shalt.err (!%p787_p12)
}
 0x226   :  { %s791_s12 = scalar_lea.hbm %s1006_s4, 128 }
 0x227   :  { %p792_p13 = scmp.ne.s32.totalorder %s1006_s4, %s791_s12  ;;  %p795_p0 = scmp.lt.u32.totalorder %s791_s12, %s1006_s4 }
 0x229   :  { %p797_p1 = pnand %p795_p0, %p792_p13 }
 0x22b   :  { %800 = shalt.err (!%p797_p1)
}
 0x22c   :  { %517 = dma.vmem_to_hbm [thread:$0]  %s515_s9, 128, %s1006_s4, [#allocation5]  }
 0x22d   :  { %801 = dma.done.wait [#allocation3], 128  }
 0x22e   :  { %802 = vsyncadd [#allocation3], 4294967168 }
 0x22f   :  { %803 = dma.done.wait [#allocation5], 128  }
 0x230   :  { %804 = vsyncadd [#allocation5], 4294967168 }
 0x231   :  { %524 = vsyncpa [#allocation3], 1 }
 0x232   :  { %525 = vsyncpa [#allocation5], 1 }

</bundles_post_ra>
